<compile_context>
chip_gen: v7x
topology: tpu7x:2x2x1
jax: 0.10.0
libtpu: 0.0.40
codegen_flags: <defaults>
</compile_context>

<pallas_src>
import jax
import jax.numpy as jnp
from jax import lax
from jax.experimental import pallas as pl
from jax.experimental.pallas import tpu as pltpu


def _round_up(x, m):
    return (x + m - 1) // m * m


def _cdiv(a, b):
    return -(-a // b)


def _vq_kernel(x_ref, w_ref, idx_ref, minv_ref, argm_ref):
    """One (row-tile, codebook-tile) grid step.

    x_ref   : (tm, D+1)   encoder rows, augmented as [-x | 1]
    w_ref   : (tk, D+1)   codebook tile, augmented as [w | 0.5||w||^2]
    idx_ref : (1, tm)     argmin indices (lane-dense); written on last K step
    minv_ref: (1, tm) f32 running min proxy   (scratch, carried over K axis)
    argm_ref: (1, tm) i32 running argmin      (scratch, carried over K axis)
    """
    kt = pl.program_id(1)

    @pl.when(kt == 0)
    def _():
        minv_ref[...] = jnp.full(minv_ref.shape, jnp.inf, minv_ref.dtype)
        argm_ref[...] = jnp.zeros(argm_ref.shape, argm_ref.dtype)

    # proxy[k, m] = 0.5||w_k||^2 - x_m . w_k   (argmin-equivalent to the full
    # squared distance; the ||w||^2 term rides along inside the matmul via the
    # augmented column, so there is no per-element VPU fixup after the MXU).
    proxy = lax.dot_general(w_ref[...], x_ref[...], (((1,), (1,)), ((), ())),
                            preferred_element_type=jnp.float32)    # (tk, tm)

    tk = proxy.shape[0]
    tile_min = jnp.min(proxy, axis=0, keepdims=True)               # (1, tm)
    local_iota = lax.broadcasted_iota(jnp.int32, proxy.shape, 0)
    # first-index argmin within the tile, then offset into the global codebook
    tile_arg = jnp.min(
        jnp.where(proxy == tile_min, local_iota, jnp.int32(2 ** 30)),
        axis=0, keepdims=True) + kt * tk                           # (1, tm)

    # Running argmin across K tiles (strict < keeps first-index tie semantics).
    better = tile_min < minv_ref[...]
    argm_ref[...] = jnp.where(better, tile_arg, argm_ref[...])
    minv_ref[...] = jnp.where(better, tile_min, minv_ref[...])

    @pl.when(kt == pl.num_programs(1) - 1)
    def _():
        idx_ref[...] = argm_ref[...]


def vector_quantize(x, codebook, *, tm_max=512, tk_max=1024, use_bf16=False):
    """x: [B, N, D, 1], codebook: [K, D].

    Returns (quantized [B, N, D], indices [B, N] int32) -- same forward
    semantics as VectorQuantizer.forward.
    """
    B, N, D, one = x.shape
    assert one == 1, "expected trailing singleton (matches x.squeeze(-1))"
    K, D2 = codebook.shape
    assert D2 == D

    M = B * N
    D_aug = D + 1

    # ---- row tiling: lane-dense multiples of 128; aim for >= 2 grid steps so
    # both v7x TensorCores get work; tm_max is the per-generation sweep knob
    # (drop to 256 for large K on v7x, raise to 1024+ for small K on v5e/v6e).
    tm_max = max(128, _round_up(tm_max, 128))
    M_pad = _round_up(M, 128)
    tm = min(tm_max, max(128, _round_up(_cdiv(M_pad, 2), 128)))
    M_pad = _round_up(M_pad, tm)

    # ---- codebook tiling: K-tiled running argmin bounds peak VMEM (v7x has
    # only 64 MiB physical); small codebooks collapse to a single tile.
    tk_max = max(128, _round_up(tk_max, 128))
    K_pad = _round_up(K, 128)
    tk = min(tk_max, K_pad)
    K_pad = _round_up(K_pad, tk)
    nk = K_pad // tk

    # ---- augmented operands so the proxy comes straight out of the MXU.
    compute_dtype = jnp.bfloat16 if use_bf16 else jnp.float32
    wf = codebook.astype(jnp.float32)
    half_wsq = 0.5 * jnp.sum(wf * wf, axis=-1, keepdims=True)          # (K, 1)
    w_aug = jnp.concatenate([wf, half_wsq], axis=1)                    # (K, D+1)
    if K_pad != K:
        w_aug = jnp.pad(w_aug, ((0, K_pad - K), (0, 0)))
        w_aug = w_aug.at[K:, -1].set(jnp.float32(1e30))   # pads never win argmin
    xf = x.reshape(M, D).astype(jnp.float32)              # squeeze(-1) + flatten
    x_aug = jnp.concatenate([-xf, jnp.ones((M, 1), jnp.float32)], axis=1)
    if M_pad != M:
        x_aug = jnp.pad(x_aug, ((0, M_pad - M), (0, 0)))
    w_aug = w_aug.astype(compute_dtype)
    x_aug = x_aug.astype(compute_dtype)

    # ---- scoped-VMEM sizing (defaults are only 16/32 MiB; stay under v7x's
    # 64 MiB physical with headroom).
    bpe = jnp.dtype(compute_dtype).itemsize
    vmem_need = (2 * tm * D_aug * bpe          # x tile (double-buffered)
                 + 2 * tk * D_aug * bpe        # codebook tile
                 + 2 * tm * 4                  # index output
                 + 5 * tk * tm * 4             # proxy + compare/select temps
                 + 2 * tm * 4)                 # running min/argmin scratch
    vmem_limit = int(min(max(2 * vmem_need, 32 * 2 ** 20), 48 * 2 ** 20))

    def build(codebook_spec):
        return pl.pallas_call(
            _vq_kernel,
            out_shape=jax.ShapeDtypeStruct((1, M_pad), jnp.int32),
            grid_spec=pltpu.PrefetchScalarGridSpec(
                num_scalar_prefetch=0,
                grid=(M_pad // tm, nk),
                in_specs=[
                    pl.BlockSpec((tm, D_aug), lambda i, k: (i, 0)),  # x rows
                    codebook_spec,                                   # codebook
                ],
                out_specs=pl.BlockSpec((1, tm), lambda i, k: (0, i)),
                scratch_shapes=[pltpu.VMEM((1, tm), jnp.float32),
                                pltpu.VMEM((1, tm), jnp.int32)],
            ),
            compiler_params=pltpu.CompilerParams(
                dimension_semantics=("parallel", "arbitrary"),
                vmem_limit_bytes=vmem_limit),
        )

    w_index_map = lambda i, k: (k, 0)
    if nk == 1:
        # Grid-invariant codebook block: single-buffer it (double-buffering a
        # constant block is pure VMEM waste).  Fall back cleanly if this jax
        # build rejects Buffered(1).
        try:
            spec = pl.BlockSpec((tk, D_aug), w_index_map,
                                pipeline_mode=pl.Buffered(buffer_count=1))
            idx2d = jax.block_until_ready(build(spec)(x_aug, w_aug))
        except Exception:
            idx2d = build(pl.BlockSpec((tk, D_aug), w_index_map))(x_aug, w_aug)
    else:
        idx2d = build(pl.BlockSpec((tk, D_aug), w_index_map))(x_aug, w_aug)

    indices = idx2d[0, :M].reshape(B, N)
    # Codebook gather in the wrapper: an HBM gather of M*D values is trivial
    # for XLA and doing it here halves the kernel's MXU work.
    quantized = jnp.take(codebook, indices, axis=0)                 # (B, N, D)
    return quantized, indices


def vq_loss(x, quantized, beta):
    # Mirrors VectorQuantizer.loss, with .detach() expressed via stop_gradient
    # (forward value is unchanged: (1 + beta) * MSE).
    commitment_loss = jnp.mean((lax.stop_gradient(quantized) - x) ** 2)
    codebook_loss = jnp.mean((lax.stop_gradient(x) - quantized) ** 2)
    return codebook_loss + beta * commitment_loss


if __name__ == "__main__":
    embedding_dim = 8
    num_embeddings = 32
    beta = 0.25

    key = jax.random.PRNGKey(0)
    kx, kw = jax.random.split(key)

    # x: [B, N, D, 1] -- trailing singleton matches the x.squeeze(-1) in forward.
    B, N = 2, 16
    x = jax.random.normal(kx, (B, N, embedding_dim, 1), dtype=jnp.float32)
    # torch.nn.Embedding default init: weight ~ N(0, 1), shape [K, D].
    codebook = jax.random.normal(kw, (num_embeddings, embedding_dim),
                                 dtype=jnp.float32)

    quant, idx = vector_quantize(x, codebook)
    quant = jax.block_until_ready(quant)
    idx = jax.block_until_ready(idx)

    # Pure-JAX reference check (cdist + argmin + embedding lookup).
    xs = x[..., 0]                                              # [B, N, D]
    d_ref = jnp.sqrt(jnp.maximum(
        jnp.sum(xs * xs, -1, keepdims=True)
        - 2.0 * jnp.einsum("bnd,kd->bnk", xs, codebook)
        + jnp.sum(codebook * codebook, -1), 0.0))               # [B, N, K]
    idx_ref = jnp.argmin(d_ref, axis=-1).astype(jnp.int32)      # [B, N]
    quant_ref = codebook[idx_ref]                               # [B, N, D]

    assert jnp.array_equal(idx, idx_ref), "index mismatch"
    assert jnp.allclose(quant, quant_ref, atol=1e-5), "quantized mismatch"

    _ = vq_loss(xs, quant, beta)  # exercise the loss path too

    print("KERNEL_OK")
</pallas_src>

<mosaic_0001>
module attributes {stable_mosaic.version = 11 : i64} {
  func.func @_vq_kernel(%arg0: i32, %arg1: i32, %arg2: memref<128x9xf32, #tpu.memory_space<vmem>>, %arg3: memref<128x9xf32, #tpu.memory_space<vmem>>, %arg4: memref<1x128xi32, #tpu.memory_space<vmem>>, %arg5: memref<1x128xf32, #tpu.memory_space<vmem>>, %arg6: memref<1x128xi32, #tpu.memory_space<vmem>>) attributes {dimension_semantics = [#tpu.dimension_semantics<parallel>, #tpu.dimension_semantics<arbitrary>], iteration_bounds = array<i64: 1, 1>, scalar_prefetch = 0 : i64, scratch_operands = 2 : i64, tpu.core_type = #tpu.core_type<tc>, window_params = [{transform_indices = @transform_0, window_bounds = array<i64: 128, 9>}, {pipeline_mode = #tpu.pipeline_mode<synchronous>, transform_indices = @transform_1, window_bounds = array<i64: 128, 9>}, {transform_indices = @transform_2, window_bounds = array<i64: 1, 128>}]} {
    %c0_i32 = arith.constant 0 : i32
    %0 = arith.cmpi eq, %arg1, %c0_i32 : i32
    %1 = arith.extui %0 : i1 to i32
    %c0_i32_0 = arith.constant 0 : i32
    %2 = arith.cmpi ne, %1, %c0_i32_0 : i32
    scf.if %2 {
      %cst_18 = arith.constant 0x7F800000 : f32
      %29 = vector.broadcast %cst_18 : f32 to vector<1x128xf32>
      %c0_19 = arith.constant 0 : index
      %c0_20 = arith.constant 0 : index
      %30 = vector.load %arg5[%c0_19, %c0_20] : memref<1x128xf32, #tpu.memory_space<vmem>>, vector<1x128xf32>
      tpu.vector_store %arg5[%c0_19, %c0_20], %29 {strides = array<i32>} : memref<1x128xf32, #tpu.memory_space<vmem>>, vector<1x128xf32>,
      %c0_i32_21 = arith.constant 0 : i32
      %31 = vector.broadcast %c0_i32_21 : i32 to vector<1x128xi32>
      %c0_22 = arith.constant 0 : index
      %c0_23 = arith.constant 0 : index
      %32 = vector.load %arg6[%c0_22, %c0_23] : memref<1x128xi32, #tpu.memory_space<vmem>>, vector<1x128xi32>
      tpu.vector_store %arg6[%c0_22, %c0_23], %31 {strides = array<i32>} : memref<1x128xi32, #tpu.memory_space<vmem>>, vector<1x128xi32>,
    } else {
    }
    %c0 = arith.constant 0 : index
    %c0_1 = arith.constant 0 : index
    %3 = vector.load %arg3[%c0, %c0_1] : memref<128x9xf32, #tpu.memory_space<vmem>>, vector<128x9xf32>
    %c0_2 = arith.constant 0 : index
    %c0_3 = arith.constant 0 : index
    %4 = vector.load %arg2[%c0_2, %c0_3] : memref<128x9xf32, #tpu.memory_space<vmem>>, vector<128x9xf32>
    %cst = arith.constant dense<0.000000e+00> : vector<128x128xf32>
    %5 = tpu.matmul %3, %4, %cst {dimension_numbers = #tpu.dot_dimension_numbers<[1], [1], [0], [0], [0, 0, 1, 0], [], []>} : vector<128x9xf32>, vector<128x9xf32>, vector<128x128xf32> -> vector<128x128xf32>
    %cst_4 = arith.constant dense<0x7F800000> : vector<128xf32>
    %6 = vector.multi_reduction <minimumf>, %5, %cst_4 [0] : vector<128x128xf32> to vector<128xf32>
    %7 = vector.shape_cast %6 : vector<128xf32> to vector<1x128xf32>
    %8 = tpu.iota {dimensions = array<i32: 0>} : vector<128x128xi32>
    %9 = vector.broadcast %7 : vector<1x128xf32> to vector<128x128xf32>
    %10 = arith.cmpf oeq, %5, %9 : vector<128x128xf32>
    %c1073741824_i32 = arith.constant 1073741824 : i32
    %11 = vector.broadcast %c1073741824_i32 : i32 to vector<128x128xi32>
    %12 = arith.select %10, %8, %11 : vector<128x128xi1>, vector<128x128xi32>
    %cst_5 = arith.constant dense<2147483647> : vector<128xi32>
    %13 = vector.multi_reduction <minsi>, %12, %cst_5 [0] : vector<128x128xi32> to vector<128xi32>
    %14 = vector.shape_cast %13 : vector<128xi32> to vector<1x128xi32>
    %c128_i32 = arith.constant 128 : i32
    %15 = arith.muli %arg1, %c128_i32 : i32
    %16 = vector.broadcast %15 : i32 to vector<1x128xi32>
    %17 = arith.addi %14, %16 : vector<1x128xi32>
    %c0_6 = arith.constant 0 : index
    %c0_7 = arith.constant 0 : index
    %18 = vector.load %arg5[%c0_6, %c0_7] : memref<1x128xf32, #tpu.memory_space<vmem>>, vector<1x128xf32>
    %19 = arith.cmpf olt, %7, %18 : vector<1x128xf32>
    %c0_8 = arith.constant 0 : index
    %c0_9 = arith.constant 0 : index
    %20 = vector.load %arg6[%c0_8, %c0_9] : memref<1x128xi32, #tpu.memory_space<vmem>>, vector<1x128xi32>
    %21 = arith.select %19, %17, %20 : vector<1x128xi1>, vector<1x128xi32>
    %c0_10 = arith.constant 0 : index
    %c0_11 = arith.constant 0 : index
    %22 = vector.load %arg6[%c0_10, %c0_11] : memref<1x128xi32, #tpu.memory_space<vmem>>, vector<1x128xi32>
    tpu.vector_store %arg6[%c0_10, %c0_11], %21 {strides = array<i32>} : memref<1x128xi32, #tpu.memory_space<vmem>>, vector<1x128xi32>,
    %c0_12 = arith.constant 0 : index
    %c0_13 = arith.constant 0 : index
    %23 = vector.load %arg5[%c0_12, %c0_13] : memref<1x128xf32, #tpu.memory_space<vmem>>, vector<1x128xf32>
    %24 = arith.select %19, %7, %23 : vector<1x128xi1>, vector<1x128xf32>
    %c0_14 = arith.constant 0 : index
    %c0_15 = arith.constant 0 : index
    %25 = vector.load %arg5[%c0_14, %c0_15] : memref<1x128xf32, #tpu.memory_space<vmem>>, vector<1x128xf32>
    tpu.vector_store %arg5[%c0_14, %c0_15], %24 {strides = array<i32>} : memref<1x128xf32, #tpu.memory_space<vmem>>, vector<1x128xf32>,
    %c0_i32_16 = arith.constant 0 : i32
    %26 = arith.cmpi eq, %arg1, %c0_i32_16 : i32
    %27 = arith.extui %26 : i1 to i32
    %c0_i32_17 = arith.constant 0 : i32
    %28 = arith.cmpi ne, %27, %c0_i32_17 : i32
    scf.if %28 {
      %c0_18 = arith.constant 0 : index
      %c0_19 = arith.constant 0 : index
      %29 = vector.load %arg6[%c0_18, %c0_19] : memref<1x128xi32, #tpu.memory_space<vmem>>, vector<1x128xi32>
      %c0_20 = arith.constant 0 : index
      %c0_21 = arith.constant 0 : index
      %30 = vector.load %arg4[%c0_20, %c0_21] : memref<1x128xi32, #tpu.memory_space<vmem>>, vector<1x128xi32>
      tpu.vector_store %arg4[%c0_20, %c0_21], %29 {strides = array<i32>} : memref<1x128xi32, #tpu.memory_space<vmem>>, vector<1x128xi32>,
    } else {
    }
    return
  }
  func.func @transform_0(%arg0: i32, %arg1: i32) -> (i32, i32) {
    %c0_i32 = arith.constant 0 : i32
    %c0_i32_0 = arith.constant 0 : i32
    return %arg0, %c0_i32 : i32, i32
  }
  func.func @transform_1(%arg0: i32, %arg1: i32) -> (i32, i32) {
    %c0_i32 = arith.constant 0 : i32
    %c0_i32_0 = arith.constant 0 : i32
    return %arg1, %c0_i32 : i32, i32
  }
  func.func @transform_2(%arg0: i32, %arg1: i32) -> (i32, i32) {
    %c0_i32 = arith.constant 0 : i32
    %c0_i32_0 = arith.constant 0 : i32
    return %c0_i32, %arg0 : i32, i32
  }
}

module attributes {stable_mosaic.version = 11 : i64} {
  func.func @_vq_kernel(%arg0: i32, %arg1: i32, %arg2: memref<128x9xf32, #tpu.memory_space<vmem>>, %arg3: memref<128x9xf32, #tpu.memory_space<vmem>>, %arg4: memref<1x128xi32, #tpu.memory_space<vmem>>, %arg5: memref<1x128xf32, #tpu.memory_space<vmem>>, %arg6: memref<1x128xi32, #tpu.memory_space<vmem>>) attributes {dimension_semantics = [#tpu.dimension_semantics<parallel>, #tpu.dimension_semantics<arbitrary>], iteration_bounds = array<i64: 1, 1>, scalar_prefetch = 0 : i64, scratch_operands = 2 : i64, tpu.core_type = #tpu.core_type<tc>, window_params = [{transform_indices = @transform_0, window_bounds = array<i64: 128, 9>}, {transform_indices = @transform_1, window_bounds = array<i64: 128, 9>}, {transform_indices = @transform_2, window_bounds = array<i64: 1, 128>}]} {
    %c0_i32 = arith.constant 0 : i32
    %0 = arith.cmpi eq, %arg1, %c0_i32 : i32
    %1 = arith.extui %0 : i1 to i32
    %c0_i32_0 = arith.constant 0 : i32
    %2 = arith.cmpi ne, %1, %c0_i32_0 : i32
    scf.if %2 {
      %cst_18 = arith.constant 0x7F800000 : f32
      %29 = vector.broadcast %cst_18 : f32 to vector<1x128xf32>
      %c0_19 = arith.constant 0 : index
      %c0_20 = arith.constant 0 : index
      %30 = vector.load %arg5[%c0_19, %c0_20] : memref<1x128xf32, #tpu.memory_space<vmem>>, vector<1x128xf32>
      tpu.vector_store %arg5[%c0_19, %c0_20], %29 {strides = array<i32>} : memref<1x128xf32, #tpu.memory_space<vmem>>, vector<1x128xf32>,
      %c0_i32_21 = arith.constant 0 : i32
      %31 = vector.broadcast %c0_i32_21 : i32 to vector<1x128xi32>
      %c0_22 = arith.constant 0 : index
      %c0_23 = arith.constant 0 : index
      %32 = vector.load %arg6[%c0_22, %c0_23] : memref<1x128xi32, #tpu.memory_space<vmem>>, vector<1x128xi32>
      tpu.vector_store %arg6[%c0_22, %c0_23], %31 {strides = array<i32>} : memref<1x128xi32, #tpu.memory_space<vmem>>, vector<1x128xi32>,
    } else {
    }
    %c0 = arith.constant 0 : index
    %c0_1 = arith.constant 0 : index
    %3 = vector.load %arg3[%c0, %c0_1] : memref<128x9xf32, #tpu.memory_space<vmem>>, vector<128x9xf32>
    %c0_2 = arith.constant 0 : index
    %c0_3 = arith.constant 0 : index
    %4 = vector.load %arg2[%c0_2, %c0_3] : memref<128x9xf32, #tpu.memory_space<vmem>>, vector<128x9xf32>
    %cst = arith.constant dense<0.000000e+00> : vector<128x128xf32>
    %5 = tpu.matmul %3, %4, %cst {dimension_numbers = #tpu.dot_dimension_numbers<[1], [1], [0], [0], [0, 0, 1, 0], [], []>} : vector<128x9xf32>, vector<128x9xf32>, vector<128x128xf32> -> vector<128x128xf32>
    %cst_4 = arith.constant dense<0x7F800000> : vector<128xf32>
    %6 = vector.multi_reduction <minimumf>, %5, %cst_4 [0] : vector<128x128xf32> to vector<128xf32>
    %7 = vector.shape_cast %6 : vector<128xf32> to vector<1x128xf32>
    %8 = tpu.iota {dimensions = array<i32: 0>} : vector<128x128xi32>
    %9 = vector.broadcast %7 : vector<1x128xf32> to vector<128x128xf32>
    %10 = arith.cmpf oeq, %5, %9 : vector<128x128xf32>
    %c1073741824_i32 = arith.constant 1073741824 : i32
    %11 = vector.broadcast %c1073741824_i32 : i32 to vector<128x128xi32>
    %12 = arith.select %10, %8, %11 : vector<128x128xi1>, vector<128x128xi32>
    %cst_5 = arith.constant dense<2147483647> : vector<128xi32>
    %13 = vector.multi_reduction <minsi>, %12, %cst_5 [0] : vector<128x128xi32> to vector<128xi32>
    %14 = vector.shape_cast %13 : vector<128xi32> to vector<1x128xi32>
    %c128_i32 = arith.constant 128 : i32
    %15 = arith.muli %arg1, %c128_i32 : i32
    %16 = vector.broadcast %15 : i32 to vector<1x128xi32>
    %17 = arith.addi %14, %16 : vector<1x128xi32>
    %c0_6 = arith.constant 0 : index
    %c0_7 = arith.constant 0 : index
    %18 = vector.load %arg5[%c0_6, %c0_7] : memref<1x128xf32, #tpu.memory_space<vmem>>, vector<1x128xf32>
    %19 = arith.cmpf olt, %7, %18 : vector<1x128xf32>
    %c0_8 = arith.constant 0 : index
    %c0_9 = arith.constant 0 : index
    %20 = vector.load %arg6[%c0_8, %c0_9] : memref<1x128xi32, #tpu.memory_space<vmem>>, vector<1x128xi32>
    %21 = arith.select %19, %17, %20 : vector<1x128xi1>, vector<1x128xi32>
    %c0_10 = arith.constant 0 : index
    %c0_11 = arith.constant 0 : index
    %22 = vector.load %arg6[%c0_10, %c0_11] : memref<1x128xi32, #tpu.memory_space<vmem>>, vector<1x128xi32>
    tpu.vector_store %arg6[%c0_10, %c0_11], %21 {strides = array<i32>} : memref<1x128xi32, #tpu.memory_space<vmem>>, vector<1x128xi32>,
    %c0_12 = arith.constant 0 : index
    %c0_13 = arith.constant 0 : index
    %23 = vector.load %arg5[%c0_12, %c0_13] : memref<1x128xf32, #tpu.memory_space<vmem>>, vector<1x128xf32>
    %24 = arith.select %19, %7, %23 : vector<1x128xi1>, vector<1x128xf32>
    %c0_14 = arith.constant 0 : index
    %c0_15 = arith.constant 0 : index
    %25 = vector.load %arg5[%c0_14, %c0_15] : memref<1x128xf32, #tpu.memory_space<vmem>>, vector<1x128xf32>
    tpu.vector_store %arg5[%c0_14, %c0_15], %24 {strides = array<i32>} : memref<1x128xf32, #tpu.memory_space<vmem>>, vector<1x128xf32>,
    %c0_i32_16 = arith.constant 0 : i32
    %26 = arith.cmpi eq, %arg1, %c0_i32_16 : i32
    %27 = arith.extui %26 : i1 to i32
    %c0_i32_17 = arith.constant 0 : i32
    %28 = arith.cmpi ne, %27, %c0_i32_17 : i32
    scf.if %28 {
      %c0_18 = arith.constant 0 : index
      %c0_19 = arith.constant 0 : index
      %29 = vector.load %arg6[%c0_18, %c0_19] : memref<1x128xi32, #tpu.memory_space<vmem>>, vector<1x128xi32>
      %c0_20 = arith.constant 0 : index
      %c0_21 = arith.constant 0 : index
      %30 = vector.load %arg4[%c0_20, %c0_21] : memref<1x128xi32, #tpu.memory_space<vmem>>, vector<1x128xi32>
      tpu.vector_store %arg4[%c0_20, %c0_21], %29 {strides = array<i32>} : memref<1x128xi32, #tpu.memory_space<vmem>>, vector<1x128xi32>,
    } else {
    }
    return
  }
  func.func @transform_0(%arg0: i32, %arg1: i32) -> (i32, i32) {
    %c0_i32 = arith.constant 0 : i32
    %c0_i32_0 = arith.constant 0 : i32
    return %arg0, %c0_i32 : i32, i32
  }
  func.func @transform_1(%arg0: i32, %arg1: i32) -> (i32, i32) {
    %c0_i32 = arith.constant 0 : i32
    %c0_i32_0 = arith.constant 0 : i32
    return %arg1, %c0_i32 : i32, i32
  }
  func.func @transform_2(%arg0: i32, %arg1: i32) -> (i32, i32) {
    %c0_i32 = arith.constant 0 : i32
    %c0_i32_0 = arith.constant 0 : i32
    return %c0_i32, %arg0 : i32, i32
  }
}

</mosaic_0001>

<bundles_post_ra>
// kernel: tpu_custom_call.1
= control target key start
LH: loop header
LB: loop body
LE: loop exit
PB: predicated region body
PF: predicated region fallthrough
CT: control target
= control target key end

     0   :  { %vm50_vm0 = vcmask 72704   ;;  %s985_s0 = inlined_call_operand.vmem [shape: f32[128,9], index: 0, kind: input, shape index: {}]   ;;  %s986_s1 = inlined_call_operand.vmem [shape: f32[128,9], index: 1, kind: input, shape index: {}]   ;;  %s987_s2 = inlined_call_operand.hbm [shape: s32[1,128], index: 2, kind: output, shape index: {}]  }
   0x1   :  { %v34_v0 = vld [vmem:[%s985_s0] sm:$0xff]  ;;  %v35_v1 = vld [vmem:[%s985_s0 + $0x8] sm:$0xff]  ;;  %v36_v2 = vld [vmem:[%s985_s0 + $0x10] sm:$0xff] }
   0x2   :  { %v551_v3 = vpack.c.bf16 %v35_v1, %v34_v0  ;;  %vm671_vm1 = vmpackc.low %vm50_vm0, %vm50_vm0  ;;  %v37_v5 = vld [vmem:[%s985_s0 + $0x18] sm:$0xff]  ;;  %v18_v7 = vld [vmem:[%s986_s1] sm:$0xff] }
   0x3   :  { %v557_v6 = vpack.c.bf16 %v37_v5, %v36_v2  ;;  %v38_v8 = vld [vmem:[%s985_s0 + $0x20] sm:$0xff]  ;;  %v39_v9 = vld [vmem:[%s985_s0 + $0x28] sm:$0xff]  ;;  %527 = vmatprep.mubr.msk.f32.mxu0 %vm50_vm0, %v18_v7 }
   0x4   :  { %553 = vmatprep.subr.msk.bf16.mxu0 %vm671_vm1, %v551_v3  ;;  %599 = vmatprep.subr.msk.bf16.mxu1 %vm671_vm1, %v551_v3  ;;  %v26_v10 = vld [vmem:[%s986_s1 + $0x40] sm:$0xff]  ;;  %v563_v11 = vpack.c.bf16 %v39_v9, %v38_v8 }
   0x5   :  { %556 = vmatpush3.bf16.xpose.msk.msra.mxu0 %vm671_vm1, %v551_v3  ;;  %607 = vmatpush3.bf16.xpose.msk.msra.mxu1 %vm671_vm1, %v551_v3 }
   0x6   :  { %559 = vmatprep.subr.msk.bf16.mxu0 %vm671_vm1, %v557_v6  ;;  %600 = vmatprep.subr.msk.bf16.mxu1 %vm671_vm1, %v557_v6 }
   0x7   :  { %539 = vmatprep.mubr.msk.f32.mxu1 %vm50_vm0, %v26_v10 }
   0x8   :  { %7 = vsyncpa [#allocation5], 0  ;;  %v40_v12 = vld [vmem:[%s985_s0 + $0x30] sm:$0xff]  ;;  %v41_v13 = vld [vmem:[%s985_s0 + $0x38] sm:$0xff]  ;;  %v642_v41 = vmov inf   ;;  %v643_v42 = vmov 0   ;;  %v313_v10 = vlaneseq }
   0x9   :  { %v569_v14 = vpack.c.bf16 %v41_v13, %v40_v12  ;;  %v42_v15 = vld [vmem:[%s985_s0 + $0x40] sm:$0xff]  ;;  %v43_v16 = vld [vmem:[%s985_s0 + $0x48] sm:$0xff]  ;;  %v44_v18 = vld [vmem:[%s985_s0 + $0x50] sm:$0xff]  ;;  %16 = vst [vmem:[#allocation2] sm:$0x1] %v642_v41 }
   0xa   :  { %v575_v17 = vpack.c.bf16 %v43_v16, %v42_v15  ;;  %v45_v19 = vld [vmem:[%s985_s0 + $0x58] sm:$0xff]  ;;  %v46_v21 = vld [vmem:[%s985_s0 + $0x60] sm:$0xff]  ;;  %v47_v22 = vld [vmem:[%s985_s0 + $0x68] sm:$0xff]  ;;  %17 = vst [vmem:[#allocation3] sm:$0x1] %v643_v42  ;;  %v314_v13 = vshrl.u32 %v313_v10, 7 }
   0xb   :  { %v581_v20 = vpack.c.bf16 %v45_v19, %v44_v18  ;;  %v587_v23 = vpack.c.bf16 %v47_v22, %v46_v21  ;;  %v48_v24 = vld [vmem:[%s985_s0 + $0x70] sm:$0xff]  ;;  %v49_v25 = vld [vmem:[%s985_s0 + $0x78] sm:$0xff]  ;;  %v19_v27 = vld [vmem:[%s986_s1 + $0x8] sm:$0xff] }
   0xc   :  { %v593_v26 = vpack.c.bf16 %v49_v25, %v48_v24  ;;  %v27_v28 = vld [vmem:[%s986_s1 + $0x48] sm:$0xff]  ;;  %v20_v29 = vld [vmem:[%s986_s1 + $0x10] sm:$0xff]  ;;  %v21_v31 = vld [vmem:[%s986_s1 + $0x18] sm:$0xff]  ;;  %v315_v16 = vadd.s32 8, %v314_v13  ;;  %v316_v18 = vadd.s32 16, %v314_v13  ;;  %v317_v19 = vadd.s32 24, %v314_v13 }
   0xd   :  { %562 = vmatpush3.bf16.xpose.msk.msra.mxu0 %vm671_vm1, %v557_v6  ;;  %608 = vmatpush3.bf16.xpose.msk.msra.mxu1 %vm671_vm1, %v557_v6  ;;  %v28_v30 = vld [vmem:[%s986_s1 + $0x50] sm:$0xff]  ;;  %v29_v32 = vld [vmem:[%s986_s1 + $0x58] sm:$0xff]  ;;  %v22_v33 = vld [vmem:[%s986_s1 + $0x20] sm:$0xff]  ;;  %v319_v21 = vadd.s32 40, %v314_v13  ;;  %v320_v22 = vadd.s32 48, %v314_v13  ;;  %v322_v24 = vadd.s32 64, %v314_v13 }
   0xe   :  { %565 = vmatprep.subr.msk.bf16.mxu0 %vm671_vm1, %v563_v11  ;;  %601 = vmatprep.subr.msk.bf16.mxu1 %vm671_vm1, %v563_v11  ;;  %v30_v34 = vld [vmem:[%s986_s1 + $0x60] sm:$0xff]  ;;  %v23_v35 = vld [vmem:[%s986_s1 + $0x28] sm:$0xff]  ;;  %v24_v37 = vld [vmem:[%s986_s1 + $0x30] sm:$0xff] }
   0xf   :  { %v31_v36 = vld [vmem:[%s986_s1 + $0x68] sm:$0xff]  ;;  %v32_v38 = vld [vmem:[%s986_s1 + $0x70] sm:$0xff]  ;;  %v25_v39 = vld [vmem:[%s986_s1 + $0x38] sm:$0xff] }
  0x10   :  { %v33_v40 = vld [vmem:[%s986_s1 + $0x78] sm:$0xff]  ;;  %s644_s1 = smov [#allocation4]  }
  0x11   :  { %s423_s16 = sshll.u32 %s644_s1, 4  ;;  %s424_s16 = int_to_ptr.vmem [resolvable:$true] %s423_s16 }
  0x12   :  { %s618_s0 = scalar_lea.vmem %s424_s16, 16  ;;  %s622_s17 = scalar_lea.vmem %s424_s16, 32 }
  0x13   :  { %p619_p0 = scmp.ne.s32.totalorder %s424_s16, %s618_s0  ;;  %p623_p1 = scmp.lt.s32.totalorder %s424_s16, %s424_s16 }
  0x14   :  { %p624_p2 = scmp.lt.s32.totalorder %s622_s17, %s618_s0 }
  0x15   :  { %568 = vmatpush3.bf16.xpose.msk.msra.mxu0 %vm671_vm1, %v563_v11  ;;  %609 = vmatpush3.bf16.xpose.msk.msra.mxu1 %vm671_vm1, %v563_v11 }
  0x16   :  { %571 = vmatprep.subr.msk.bf16.mxu0 %vm671_vm1, %v569_v14  ;;  %602 = vmatprep.subr.msk.bf16.mxu1 %vm671_vm1, %v569_v14  ;;  %p625_p3 = por %p624_p2, %p623_p1 }
  0x18   :  { %p626_p4 = pnand %p625_p3, %p619_p0 }
  0x1d   :  { %574 = vmatpush3.bf16.xpose.msk.msra.mxu0 %vm671_vm1, %v569_v14  ;;  %610 = vmatpush3.bf16.xpose.msk.msra.mxu1 %vm671_vm1, %v569_v14 }
  0x1e   :  { %577 = vmatprep.subr.msk.bf16.mxu0 %vm671_vm1, %v575_v17  ;;  %603 = vmatprep.subr.msk.bf16.mxu1 %vm671_vm1, %v575_v17 }
  0x25   :  { %580 = vmatpush3.bf16.xpose.msk.msra.mxu0 %vm671_vm1, %v575_v17  ;;  %611 = vmatpush3.bf16.xpose.msk.msra.mxu1 %vm671_vm1, %v575_v17 }
  0x26   :  { %583 = vmatprep.subr.msk.bf16.mxu0 %vm671_vm1, %v581_v20  ;;  %604 = vmatprep.subr.msk.bf16.mxu1 %vm671_vm1, %v581_v20 }
  0x2d   :  { %586 = vmatpush3.bf16.xpose.msk.msra.mxu0 %vm671_vm1, %v581_v20  ;;  %612 = vmatpush3.bf16.xpose.msk.msra.mxu1 %vm671_vm1, %v581_v20  ;;  %v318_v20 = vadd.s32 32, %v314_v13 }
  0x2e   :  { %589 = vmatprep.subr.msk.bf16.mxu0 %vm671_vm1, %v587_v23  ;;  %605 = vmatprep.subr.msk.bf16.mxu1 %vm671_vm1, %v587_v23 }
  0x35   :  { %592 = vmatpush3.bf16.xpose.msk.msra.mxu0 %vm671_vm1, %v587_v23  ;;  %613 = vmatpush3.bf16.xpose.msk.msra.mxu1 %vm671_vm1, %v587_v23  ;;  %v321_v23 = vadd.s32 56, %v314_v13 }
  0x36   :  { %595 = vmatprep.subr.msk.bf16.mxu0 %vm671_vm1, %v593_v26  ;;  %606 = vmatprep.subr.msk.bf16.mxu1 %vm671_vm1, %v593_v26 }
  0x3d   :  { %598 = vmatpush3.bf16.xpose.msk.msra.mxu0 %vm671_vm1, %v593_v26  ;;  %614 = vmatpush3.bf16.xpose.msk.msra.mxu1 %vm671_vm1, %v593_v26  ;;  %v323_v26 = vadd.s32 72, %v314_v13 }
  0x44   :  { %528 = vmatmul.mubr.msk.f32.vlgmr.msra.gmra.mrb[0].mxu0 %vm50_vm0, %v19_v27  ;;  %540 = vmatmul.mubr.msk.f32.vlgmr.msra.gmra.mrb[0].mxu1 %vm50_vm0, %v27_v28  ;;  %v324_v27 = vadd.s32 80, %v314_v13  ;;  %v325_v28 = vadd.s32 88, %v314_v13 }
  0x45   :  { %530 = vmatprep.mubr.msk.f32.mxu0 %vm50_vm0, %v20_v29  ;;  %542 = vmatprep.mubr.msk.f32.mxu1 %vm50_vm0, %v28_v30  ;;  %v326_v29 = vadd.s32 96, %v314_v13  ;;  %v327_v30 = vadd.s32 104, %v314_v13 }
  0x48   :  { %531 = vmatmul.mubr.msk.f32.gmra.mrb[2].mxu0 %vm50_vm0, %v21_v31  ;;  %543 = vmatmul.mubr.msk.f32.gmra.mrb[2].mxu1 %vm50_vm0, %v29_v32  ;;  %v328_v31 = vadd.s32 112, %v314_v13  ;;  %v329_v32 = vadd.s32 120, %v314_v13 }
  0x49   :  { %533 = vmatprep.mubr.msk.f32.mxu0 %vm50_vm0, %v22_v33  ;;  %545 = vmatprep.mubr.msk.f32.mxu1 %vm50_vm0, %v30_v34 }
  0x4c   :  { %534 = vmatmul.mubr.msk.f32.gmra.mrb[4].mxu0 %vm50_vm0, %v23_v35  ;;  %546 = vmatmul.mubr.msk.f32.gmra.mrb[4].mxu1 %vm50_vm0, %v31_v36 }
  0x4d   :  { %536 = vmatprep.mubr.msk.f32.mxu0 %vm50_vm0, %v24_v37  ;;  %548 = vmatprep.mubr.msk.f32.mxu1 %vm50_vm0, %v32_v38 }
  0x50   :  { %537 = vmatmul.mubr.msk.f32.gmra.mrb[6].mxu0 %vm50_vm0, %v25_v39  ;;  %549 = vmatmul.mubr.msk.f32.gmra.mrb[6].mxu1 %vm50_vm0, %v33_v40 }
 0x117   :  { %v842_v43 = vpop.f32.mrb[0].mxu0  ;;  %v844_v44 = vpop.f32.mrb[0].mxu1 }
 0x118   :  { %v846_v45 = vpop.f32.mrb[1].mxu0  ;;  %v848_v46 = vpop.f32.mrb[1].mxu1 }
 0x11b   :  { %v850_v47 = vpop.f32.mrb[2].mxu0  ;;  %v852_v48 = vpop.f32.mrb[2].mxu1 }
 0x11c   :  { %v854_v49 = vpop.f32.mrb[3].mxu0  ;;  %v856_v50 = vpop.f32.mrb[3].mxu1 }
 0x11f   :  { %v858_v51 = vpop.f32.mrb[4].mxu0  ;;  %v860_v52 = vpop.f32.mrb[4].mxu1 }
 0x120   :  { %v293_v53 = vmin.f32 %v842_v43, %v858_v51  ;;  %v864_v54 = vpop.f32.mrb[5].mxu0  ;;  %v866_v55 = vpop.f32.mrb[5].mxu1 }
 0x121   :  { %v292_v56 = vmin.f32 %v846_v45, %v864_v54 }
 0x122   :  { %v297_v57 = vmin.f32 %v293_v53, %v844_v44 }
 0x123   :  { %v871_v58 = vpop.f32.mrb[6].mxu0  ;;  %v296_v59 = vmin.f32 %v292_v56, %v848_v46  ;;  %v874_v60 = vpop.f32.mrb[6].mxu1 }
 0x124   :  { %v301_v61 = vmin.f32 %v297_v57, %v860_v52  ;;  %v295_v62 = vmin.f32 %v850_v47, %v871_v58  ;;  %v243_v63 = vpop.f32.mrb[7].mxu0  ;;  %v879_v0 = vpop.f32.mrb[7].mxu1  ;;  %v404_v57 = vld [vmem:[#allocation2] sm:$0x1] }
 0x125   :  { %v300_v1 = vmin.f32 %v296_v59, %v866_v55  ;;  %v294_v2 = vmin.f32 %v854_v49, %v243_v63 }
 0x126   :  { %v299_v3 = vmin.f32 %v295_v62, %v852_v48 }
 0x127   :  { %v304_v4 = vmin.f32 %v300_v1, %v301_v61  ;;  %v298_v5 = vmin.f32 %v294_v2, %v856_v50 }
 0x128   :  { %v303_v6 = vmin.f32 %v299_v3, %v874_v60 }
 0x129   :  { %v302_v7 = vmin.f32 %v298_v5, %v879_v0 }
 0x12b   :  { %v305_v8 = vmin.f32 %v302_v7, %v303_v6 }
 0x12d   :  { %v306_v9 = vmin.f32 %v304_v4, %v305_v8  ;;  %v406_v8 = vld [vmem:[#allocation3] sm:$0x1] }
 0x12f   :  { %v307_v11 = vrot.slane %v306_v9, 4 }
 0x131   :  { %v308_v12 = vmin.f32 %v306_v9, %v307_v11 }
 0x133   :  { %v309_v14 = vrot.slane %v308_v12, 2 }
 0x135   :  { %v310_v15 = vmin.f32 %v308_v12, %v309_v14 }
 0x137   :  { %v311_v17 = vrot.slane %v310_v15, 1 }
 0x139   :  { %v887_v25 = vmin.f32 %v310_v15, %v311_v17 }
 0x13b   :  { %vm330_vm2 = vcmp.eq.f32.partialorder %v846_v45, %v887_v25  ;;  %vm331_vm3 = vcmp.eq.f32.partialorder %v842_v43, %v887_v25  ;;  %vm332_vm4 = vcmp.eq.f32.partialorder %v854_v49, %v887_v25  ;;  %vm333_vm5 = vcmp.eq.f32.partialorder %v850_v47, %v887_v25 }
 0x13c   :  { %vm334_vm6 = vcmp.eq.f32.partialorder %v864_v54, %v887_v25  ;;  %vm335_vm7 = vcmp.eq.f32.partialorder %v858_v51, %v887_v25  ;;  %vm336_vm8 = vcmp.eq.f32.partialorder %v243_v63, %v887_v25  ;;  %vm337_vm9 = vcmp.eq.f32.partialorder %v871_v58, %v887_v25  ;;  %v409_v58 = vld [vmem:[#allocation2] sm:$0x1] }
 0x13d   :  { %vm338_vm10 = vcmp.eq.f32.partialorder %v848_v46, %v887_v25  ;;  %vm339_vm11 = vcmp.eq.f32.partialorder %v844_v44, %v887_v25  ;;  %vm340_vm12 = vcmp.eq.f32.partialorder %v856_v50, %v887_v25  ;;  %vm341_vm13 = vcmp.eq.f32.partialorder %v852_v48, %v887_v25 }
 0x13e   :  { %vm342_vm14 = vcmp.eq.f32.partialorder %v866_v55, %v887_v25  ;;  %vm343_vm15 = vcmp.eq.f32.partialorder %v860_v52, %v887_v25  ;;  %vm344_vm0 = vcmp.eq.f32.partialorder %v879_v0, %v887_v25  ;;  %vm345_vm1 = vcmp.eq.f32.partialorder %v874_v60, %v887_v25 }
 0x13f   :  { %v346_v33 = vsel %vm330_vm2, %v314_v13, 1073741824  ;;  %v347_v34 = vsel %vm331_vm3, %v315_v16, 1073741824  ;;  %v348_v35 = vsel %vm332_vm4, %v316_v18, 1073741824  ;;  %v349_v36 = vsel %vm333_vm5, %v317_v19, 1073741824 }
 0x140   :  { %v350_v37 = vsel %vm334_vm6, %v318_v20, 1073741824  ;;  %v351_v38 = vsel %vm335_vm7, %v319_v21, 1073741824  ;;  %v352_v39 = vsel %vm336_vm8, %v320_v22, 1073741824  ;;  %v353_v40 = vsel %vm337_vm9, %v321_v23, 1073741824 }
 0x141   :  { %v354_v41 = vsel %vm338_vm10, %v322_v24, 1073741824  ;;  %v355_v42 = vsel %vm339_vm11, %v323_v26, 1073741824  ;;  %v356_v43 = vsel %vm340_vm12, %v324_v27, 1073741824  ;;  %v357_v45 = vsel %vm341_vm13, %v325_v28, 1073741824 }
 0x142   :  { %v358_v47 = vsel %vm342_vm14, %v326_v29, 1073741824  ;;  %v359_v46 = vsel %vm343_vm15, %v327_v30, 1073741824  ;;  %v360_v44 = vsel %vm344_vm0, %v328_v31, 1073741824  ;;  %v361_v49 = vsel %vm345_vm1, %v329_v32, 1073741824 }
 0x143   :  { %vm362_vm2 = vcmp.lt.s32.totalorder %v346_v33, %v350_v37  ;;  %vm364_vm3 = vcmp.lt.s32.totalorder %v347_v34, %v351_v38  ;;  %vm366_vm4 = vcmp.lt.s32.totalorder %v348_v35, %v352_v39  ;;  %vm368_vm5 = vcmp.lt.s32.totalorder %v349_v36, %v353_v40 }
 0x144   :  { %v363_v48 = vsel %vm362_vm2, %v346_v33, %v350_v37  ;;  %v365_v50 = vsel %vm364_vm3, %v347_v34, %v351_v38  ;;  %v367_v51 = vsel %vm366_vm4, %v348_v35, %v352_v39  ;;  %v369_v53 = vsel %vm368_vm5, %v349_v36, %v353_v40 }
 0x145   :  { %vm370_vm6 = vcmp.lt.s32.totalorder %v363_v48, %v354_v41  ;;  %vm372_vm7 = vcmp.lt.s32.totalorder %v365_v50, %v355_v42  ;;  %vm374_vm8 = vcmp.lt.s32.totalorder %v367_v51, %v356_v43  ;;  %vm376_vm9 = vcmp.lt.s32.totalorder %v369_v53, %v357_v45 }
 0x146   :  { %v371_v52 = vsel %vm370_vm6, %v363_v48, %v354_v41  ;;  %v373_v54 = vsel %vm372_vm7, %v365_v50, %v355_v42  ;;  %v375_v55 = vsel %vm374_vm8, %v367_v51, %v356_v43  ;;  %v377_v56 = vsel %vm376_vm9, %v369_v53, %v357_v45 }
 0x147   :  { %vm378_vm10 = vcmp.lt.s32.totalorder %v371_v52, %v358_v47  ;;  %vm380_vm11 = vcmp.lt.s32.totalorder %v373_v54, %v359_v46  ;;  %vm382_vm12 = vcmp.lt.s32.totalorder %v375_v55, %v360_v44  ;;  %vm384_vm13 = vcmp.lt.s32.totalorder %v377_v56, %v361_v49 }
 0x148   :  { %v379_v59 = vsel %vm378_vm10, %v371_v52, %v358_v47  ;;  %v381_v60 = vsel %vm380_vm11, %v373_v54, %v359_v46  ;;  %v383_v61 = vsel %vm382_vm12, %v375_v55, %v360_v44  ;;  %v385_v62 = vsel %vm384_vm13, %v377_v56, %v361_v49 }
 0x149   :  { %vm386_vm14 = vcmp.lt.s32.totalorder %v379_v59, %v381_v60  ;;  %vm388_vm15 = vcmp.lt.s32.totalorder %v383_v61, %v385_v62  ;;  %vm405_vm0 = vcmp.lt.f32.partialorder %v887_v25, %v404_v57 }
 0x14a   :  { %v387_v63 = vsel %vm386_vm14, %v379_v59, %v381_v60  ;;  %v389_v0 = vsel %vm388_vm15, %v383_v61, %v385_v62  ;;  %v410_v1 = vsel %vm405_vm0, %v887_v25, %v409_v58 }
 0x14b   :  { %vm390_vm1 = vcmp.lt.s32.totalorder %v387_v63, %v389_v0  ;;  %411 = vst [vmem:[#allocation2] sm:$0x1] %v410_v1 }
 0x14c   :  { %v391_v2 = vsel %vm390_vm1, %v387_v63, %v389_v0 }
 0x14d   :  { %v392_v3 = vrot.slane %v391_v2, 4 }
 0x14f   :  { %vm393_vm2 = vcmp.lt.s32.totalorder %v391_v2, %v392_v3 }
 0x150   :  { %v394_v4 = vsel %vm393_vm2, %v391_v2, %v392_v3 }
 0x151   :  { %v395_v5 = vrot.slane %v394_v4, 2 }
 0x153   :  { %vm396_vm3 = vcmp.lt.s32.totalorder %v394_v4, %v395_v5 }
 0x154   :  { %v397_v6 = vsel %vm396_vm3, %v394_v4, %v395_v5 }
 0x155   :  { %v398_v7 = vrot.slane %v397_v6, 1 }
 0x157   :  { %vm399_vm4 = vcmp.lt.s32.totalorder %v397_v6, %v398_v7 }
 0x158   :  { %v400_v9 = vsel %vm399_vm4, %v397_v6, %v398_v7 }
 0x159   :  { %v407_v10 = vsel %vm405_vm0, %v400_v9, %v406_v8 }
 0x15a   :  { %408 = vst [vmem:[#allocation3] sm:$0x1] %v407_v10 }
 0x161   :  { %v415_v11 = vld [vmem:[#allocation3] sm:$0x1] }
 0x162   :  { %416 = vst [vmem:[#allocation4] sm:$0x1] %v415_v11 }
 0x163   :  { %629 = shalt.err (!%p626_p4)
}
 0x164   :  { %s630_s20 = scalar_lea.hbm %s987_s2, 16 }
 0x165   :  { %p631_p5 = scmp.ne.s32.totalorder %s987_s2, %s630_s20  ;;  %p634_p6 = scmp.lt.u32.totalorder %s630_s20, %s987_s2 }
 0x167   :  { %p636_p7 = pnand %p634_p6, %p631_p5 }
 0x169   :  { %639 = shalt.err (!%p636_p7)
}
 0x16a   :  { %426 = dma.vmem_to_hbm [thread:$0]  %s424_s16, 16, %s987_s2, [#allocation5]  }
 0x16b   :  { %640 = dma.done.wait [#allocation5], 16  }
 0x16c   :  { %641 = vsyncadd [#allocation5], 4294967280 }
 0x16d   :  { %430 = vsyncpa [#allocation5], 1 }

// kernel: tpu_custom_call.1
= control target key start
LH: loop header
LB: loop body
LE: loop exit
PB: predicated region body
PF: predicated region fallthrough
CT: control target
= control target key end

     0   :  { %vm50_vm0 = vcmask 72704   ;;  %s985_s0 = inlined_call_operand.vmem [shape: f32[128,9], index: 0, kind: input, shape index: {}]   ;;  %s986_s1 = inlined_call_operand.vmem [shape: f32[128,9], index: 1, kind: input, shape index: {}]   ;;  %s987_s2 = inlined_call_operand.hbm [shape: s32[1,128], index: 2, kind: output, shape index: {}]  }
   0x1   :  { %v34_v0 = vld [vmem:[%s985_s0] sm:$0xff]  ;;  %v35_v1 = vld [vmem:[%s985_s0 + $0x8] sm:$0xff]  ;;  %v36_v2 = vld [vmem:[%s985_s0 + $0x10] sm:$0xff] }
   0x2   :  { %v551_v3 = vpack.c.bf16 %v35_v1, %v34_v0  ;;  %vm671_vm1 = vmpackc.low %vm50_vm0, %vm50_vm0  ;;  %v37_v5 = vld [vmem:[%s985_s0 + $0x18] sm:$0xff]  ;;  %v18_v7 = vld [vmem:[%s986_s1] sm:$0xff] }
   0x3   :  { %v557_v6 = vpack.c.bf16 %v37_v5, %v36_v2  ;;  %v38_v8 = vld [vmem:[%s985_s0 + $0x20] sm:$0xff]  ;;  %v39_v9 = vld [vmem:[%s985_s0 + $0x28] sm:$0xff]  ;;  %527 = vmatprep.mubr.msk.f32.mxu0 %vm50_vm0, %v18_v7 }
   0x4   :  { %553 = vmatprep.subr.msk.bf16.mxu0 %vm671_vm1, %v551_v3  ;;  %599 = vmatprep.subr.msk.bf16.mxu1 %vm671_vm1, %v551_v3  ;;  %v26_v10 = vld [vmem:[%s986_s1 + $0x40] sm:$0xff]  ;;  %v563_v11 = vpack.c.bf16 %v39_v9, %v38_v8 }
   0x5   :  { %556 = vmatpush3.bf16.xpose.msk.msra.mxu0 %vm671_vm1, %v551_v3  ;;  %607 = vmatpush3.bf16.xpose.msk.msra.mxu1 %vm671_vm1, %v551_v3 }
   0x6   :  { %559 = vmatprep.subr.msk.bf16.mxu0 %vm671_vm1, %v557_v6  ;;  %600 = vmatprep.subr.msk.bf16.mxu1 %vm671_vm1, %v557_v6 }
   0x7   :  { %539 = vmatprep.mubr.msk.f32.mxu1 %vm50_vm0, %v26_v10 }
   0x8   :  { %7 = vsyncpa [#allocation5], 0  ;;  %v40_v12 = vld [vmem:[%s985_s0 + $0x30] sm:$0xff]  ;;  %v41_v13 = vld [vmem:[%s985_s0 + $0x38] sm:$0xff]  ;;  %v642_v41 = vmov inf   ;;  %v643_v42 = vmov 0   ;;  %v313_v10 = vlaneseq }
   0x9   :  { %v569_v14 = vpack.c.bf16 %v41_v13, %v40_v12  ;;  %v42_v15 = vld [vmem:[%s985_s0 + $0x40] sm:$0xff]  ;;  %v43_v16 = vld [vmem:[%s985_s0 + $0x48] sm:$0xff]  ;;  %v44_v18 = vld [vmem:[%s985_s0 + $0x50] sm:$0xff]  ;;  %16 = vst [vmem:[#allocation2] sm:$0x1] %v642_v41 }
   0xa   :  { %v575_v17 = vpack.c.bf16 %v43_v16, %v42_v15  ;;  %v45_v19 = vld [vmem:[%s985_s0 + $0x58] sm:$0xff]  ;;  %v46_v21 = vld [vmem:[%s985_s0 + $0x60] sm:$0xff]  ;;  %v47_v22 = vld [vmem:[%s985_s0 + $0x68] sm:$0xff]  ;;  %17 = vst [vmem:[#allocation3] sm:$0x1] %v643_v42  ;;  %v314_v13 = vshrl.u32 %v313_v10, 7 }
   0xb   :  { %v581_v20 = vpack.c.bf16 %v45_v19, %v44_v18  ;;  %v587_v23 = vpack.c.bf16 %v47_v22, %v46_v21  ;;  %v48_v24 = vld [vmem:[%s985_s0 + $0x70] sm:$0xff]  ;;  %v49_v25 = vld [vmem:[%s985_s0 + $0x78] sm:$0xff]  ;;  %v19_v27 = vld [vmem:[%s986_s1 + $0x8] sm:$0xff] }
   0xc   :  { %v593_v26 = vpack.c.bf16 %v49_v25, %v48_v24  ;;  %v27_v28 = vld [vmem:[%s986_s1 + $0x48] sm:$0xff]  ;;  %v20_v29 = vld [vmem:[%s986_s1 + $0x10] sm:$0xff]  ;;  %v21_v31 = vld [vmem:[%s986_s1 + $0x18] sm:$0xff]  ;;  %v315_v16 = vadd.s32 8, %v314_v13  ;;  %v316_v18 = vadd.s32 16, %v314_v13  ;;  %v317_v19 = vadd.s32 24, %v314_v13 }
   0xd   :  { %562 = vmatpush3.bf16.xpose.msk.msra.mxu0 %vm671_vm1, %v557_v6  ;;  %608 = vmatpush3.bf16.xpose.msk.msra.mxu1 %vm671_vm1, %v557_v6  ;;  %v28_v30 = vld [vmem:[%s986_s1 + $0x50] sm:$0xff]  ;;  %v29_v32 = vld [vmem:[%s986_s1 + $0x58] sm:$0xff]  ;;  %v22_v33 = vld [vmem:[%s986_s1 + $0x20] sm:$0xff]  ;;  %v319_v21 = vadd.s32 40, %v314_v13  ;;  %v320_v22 = vadd.s32 48, %v314_v13  ;;  %v322_v24 = vadd.s32 64, %v314_v13 }
   0xe   :  { %565 = vmatprep.subr.msk.bf16.mxu0 %vm671_vm1, %v563_v11  ;;  %601 = vmatprep.subr.msk.bf16.mxu1 %vm671_vm1, %v563_v11  ;;  %v30_v34 = vld [vmem:[%s986_s1 + $0x60] sm:$0xff]  ;;  %v23_v35 = vld [vmem:[%s986_s1 + $0x28] sm:$0xff]  ;;  %v24_v37 = vld [vmem:[%s986_s1 + $0x30] sm:$0xff] }
   0xf   :  { %v31_v36 = vld [vmem:[%s986_s1 + $0x68] sm:$0xff]  ;;  %v32_v38 = vld [vmem:[%s986_s1 + $0x70] sm:$0xff]  ;;  %v25_v39 = vld [vmem:[%s986_s1 + $0x38] sm:$0xff] }
  0x10   :  { %v33_v40 = vld [vmem:[%s986_s1 + $0x78] sm:$0xff]  ;;  %s644_s1 = smov [#allocation4]  }
  0x11   :  { %s423_s16 = sshll.u32 %s644_s1, 4  ;;  %s424_s16 = int_to_ptr.vmem [resolvable:$true] %s423_s16 }
  0x12   :  { %s618_s0 = scalar_lea.vmem %s424_s16, 16  ;;  %s622_s17 = scalar_lea.vmem %s424_s16, 32 }
  0x13   :  { %p619_p0 = scmp.ne.s32.totalorder %s424_s16, %s618_s0  ;;  %p623_p1 = scmp.lt.s32.totalorder %s424_s16, %s424_s16 }
  0x14   :  { %p624_p2 = scmp.lt.s32.totalorder %s622_s17, %s618_s0 }
  0x15   :  { %568 = vmatpush3.bf16.xpose.msk.msra.mxu0 %vm671_vm1, %v563_v11  ;;  %609 = vmatpush3.bf16.xpose.msk.msra.mxu1 %vm671_vm1, %v563_v11 }
  0x16   :  { %571 = vmatprep.subr.msk.bf16.mxu0 %vm671_vm1, %v569_v14  ;;  %602 = vmatprep.subr.msk.bf16.mxu1 %vm671_vm1, %v569_v14  ;;  %p625_p3 = por %p624_p2, %p623_p1 }
  0x18   :  { %p626_p4 = pnand %p625_p3, %p619_p0 }
  0x1d   :  { %574 = vmatpush3.bf16.xpose.msk.msra.mxu0 %vm671_vm1, %v569_v14  ;;  %610 = vmatpush3.bf16.xpose.msk.msra.mxu1 %vm671_vm1, %v569_v14 }
  0x1e   :  { %577 = vmatprep.subr.msk.bf16.mxu0 %vm671_vm1, %v575_v17  ;;  %603 = vmatprep.subr.msk.bf16.mxu1 %vm671_vm1, %v575_v17 }
  0x25   :  { %580 = vmatpush3.bf16.xpose.msk.msra.mxu0 %vm671_vm1, %v575_v17  ;;  %611 = vmatpush3.bf16.xpose.msk.msra.mxu1 %vm671_vm1, %v575_v17 }
  0x26   :  { %583 = vmatprep.subr.msk.bf16.mxu0 %vm671_vm1, %v581_v20  ;;  %604 = vmatprep.subr.msk.bf16.mxu1 %vm671_vm1, %v581_v20 }
  0x2d   :  { %586 = vmatpush3.bf16.xpose.msk.msra.mxu0 %vm671_vm1, %v581_v20  ;;  %612 = vmatpush3.bf16.xpose.msk.msra.mxu1 %vm671_vm1, %v581_v20  ;;  %v318_v20 = vadd.s32 32, %v314_v13 }
  0x2e   :  { %589 = vmatprep.subr.msk.bf16.mxu0 %vm671_vm1, %v587_v23  ;;  %605 = vmatprep.subr.msk.bf16.mxu1 %vm671_vm1, %v587_v23 }
  0x35   :  { %592 = vmatpush3.bf16.xpose.msk.msra.mxu0 %vm671_vm1, %v587_v23  ;;  %613 = vmatpush3.bf16.xpose.msk.msra.mxu1 %vm671_vm1, %v587_v23  ;;  %v321_v23 = vadd.s32 56, %v314_v13 }
  0x36   :  { %595 = vmatprep.subr.msk.bf16.mxu0 %vm671_vm1, %v593_v26  ;;  %606 = vmatprep.subr.msk.bf16.mxu1 %vm671_vm1, %v593_v26 }
  0x3d   :  { %598 = vmatpush3.bf16.xpose.msk.msra.mxu0 %vm671_vm1, %v593_v26  ;;  %614 = vmatpush3.bf16.xpose.msk.msra.mxu1 %vm671_vm1, %v593_v26  ;;  %v323_v26 = vadd.s32 72, %v314_v13 }
  0x44   :  { %528 = vmatmul.mubr.msk.f32.vlgmr.msra.gmra.mrb[0].mxu0 %vm50_vm0, %v19_v27  ;;  %540 = vmatmul.mubr.msk.f32.vlgmr.msra.gmra.mrb[0].mxu1 %vm50_vm0, %v27_v28  ;;  %v324_v27 = vadd.s32 80, %v314_v13  ;;  %v325_v28 = vadd.s32 88, %v314_v13 }
  0x45   :  { %530 = vmatprep.mubr.msk.f32.mxu0 %vm50_vm0, %v20_v29  ;;  %542 = vmatprep.mubr.msk.f32.mxu1 %vm50_vm0, %v28_v30  ;;  %v326_v29 = vadd.s32 96, %v314_v13  ;;  %v327_v30 = vadd.s32 104, %v314_v13 }
  0x48   :  { %531 = vmatmul.mubr.msk.f32.gmra.mrb[2].mxu0 %vm50_vm0, %v21_v31  ;;  %543 = vmatmul.mubr.msk.f32.gmra.mrb[2].mxu1 %vm50_vm0, %v29_v32  ;;  %v328_v31 = vadd.s32 112, %v314_v13  ;;  %v329_v32 = vadd.s32 120, %v314_v13 }
  0x49   :  { %533 = vmatprep.mubr.msk.f32.mxu0 %vm50_vm0, %v22_v33  ;;  %545 = vmatprep.mubr.msk.f32.mxu1 %vm50_vm0, %v30_v34 }
  0x4c   :  { %534 = vmatmul.mubr.msk.f32.gmra.mrb[4].mxu0 %vm50_vm0, %v23_v35  ;;  %546 = vmatmul.mubr.msk.f32.gmra.mrb[4].mxu1 %vm50_vm0, %v31_v36 }
  0x4d   :  { %536 = vmatprep.mubr.msk.f32.mxu0 %vm50_vm0, %v24_v37  ;;  %548 = vmatprep.mubr.msk.f32.mxu1 %vm50_vm0, %v32_v38 }
  0x50   :  { %537 = vmatmul.mubr.msk.f32.gmra.mrb[6].mxu0 %vm50_vm0, %v25_v39  ;;  %549 = vmatmul.mubr.msk.f32.gmra.mrb[6].mxu1 %vm50_vm0, %v33_v40 }
 0x117   :  { %v842_v43 = vpop.f32.mrb[0].mxu0  ;;  %v844_v44 = vpop.f32.mrb[0].mxu1 }
 0x118   :  { %v846_v45 = vpop.f32.mrb[1].mxu0  ;;  %v848_v46 = vpop.f32.mrb[1].mxu1 }
 0x11b   :  { %v850_v47 = vpop.f32.mrb[2].mxu0  ;;  %v852_v48 = vpop.f32.mrb[2].mxu1 }
 0x11c   :  { %v854_v49 = vpop.f32.mrb[3].mxu0  ;;  %v856_v50 = vpop.f32.mrb[3].mxu1 }
 0x11f   :  { %v858_v51 = vpop.f32.mrb[4].mxu0  ;;  %v860_v52 = vpop.f32.mrb[4].mxu1 }
 0x120   :  { %v293_v53 = vmin.f32 %v842_v43, %v858_v51  ;;  %v864_v54 = vpop.f32.mrb[5].mxu0  ;;  %v866_v55 = vpop.f32.mrb[5].mxu1 }
 0x121   :  { %v292_v56 = vmin.f32 %v846_v45, %v864_v54 }
 0x122   :  { %v297_v57 = vmin.f32 %v293_v53, %v844_v44 }
 0x123   :  { %v871_v58 = vpop.f32.mrb[6].mxu0  ;;  %v296_v59 = vmin.f32 %v292_v56, %v848_v46  ;;  %v874_v60 = vpop.f32.mrb[6].mxu1 }
 0x124   :  { %v301_v61 = vmin.f32 %v297_v57, %v860_v52  ;;  %v295_v62 = vmin.f32 %v850_v47, %v871_v58  ;;  %v243_v63 = vpop.f32.mrb[7].mxu0  ;;  %v879_v0 = vpop.f32.mrb[7].mxu1  ;;  %v404_v57 = vld [vmem:[#allocation2] sm:$0x1] }
 0x125   :  { %v300_v1 = vmin.f32 %v296_v59, %v866_v55  ;;  %v294_v2 = vmin.f32 %v854_v49, %v243_v63 }
 0x126   :  { %v299_v3 = vmin.f32 %v295_v62, %v852_v48 }
 0x127   :  { %v304_v4 = vmin.f32 %v300_v1, %v301_v61  ;;  %v298_v5 = vmin.f32 %v294_v2, %v856_v50 }
 0x128   :  { %v303_v6 = vmin.f32 %v299_v3, %v874_v60 }
 0x129   :  { %v302_v7 = vmin.f32 %v298_v5, %v879_v0 }
 0x12b   :  { %v305_v8 = vmin.f32 %v302_v7, %v303_v6 }
 0x12d   :  { %v306_v9 = vmin.f32 %v304_v4, %v305_v8  ;;  %v406_v8 = vld [vmem:[#allocation3] sm:$0x1] }
 0x12f   :  { %v307_v11 = vrot.slane %v306_v9, 4 }
 0x131   :  { %v308_v12 = vmin.f32 %v306_v9, %v307_v11 }
 0x133   :  { %v309_v14 = vrot.slane %v308_v12, 2 }
 0x135   :  { %v310_v15 = vmin.f32 %v308_v12, %v309_v14 }
 0x137   :  { %v311_v17 = vrot.slane %v310_v15, 1 }
 0x139   :  { %v887_v25 = vmin.f32 %v310_v15, %v311_v17 }
 0x13b   :  { %vm330_vm2 = vcmp.eq.f32.partialorder %v846_v45, %v887_v25  ;;  %vm331_vm3 = vcmp.eq.f32.partialorder %v842_v43, %v887_v25  ;;  %vm332_vm4 = vcmp.eq.f32.partialorder %v854_v49, %v887_v25  ;;  %vm333_vm5 = vcmp.eq.f32.partialorder %v850_v47, %v887_v25 }
 0x13c   :  { %vm334_vm6 = vcmp.eq.f32.partialorder %v864_v54, %v887_v25  ;;  %vm335_vm7 = vcmp.eq.f32.partialorder %v858_v51, %v887_v25  ;;  %vm336_vm8 = vcmp.eq.f32.partialorder %v243_v63, %v887_v25  ;;  %vm337_vm9 = vcmp.eq.f32.partialorder %v871_v58, %v887_v25  ;;  %v409_v58 = vld [vmem:[#allocation2] sm:$0x1] }
 0x13d   :  { %vm338_vm10 = vcmp.eq.f32.partialorder %v848_v46, %v887_v25  ;;  %vm339_vm11 = vcmp.eq.f32.partialorder %v844_v44, %v887_v25  ;;  %vm340_vm12 = vcmp.eq.f32.partialorder %v856_v50, %v887_v25  ;;  %vm341_vm13 = vcmp.eq.f32.partialorder %v852_v48, %v887_v25 }
 0x13e   :  { %vm342_vm14 = vcmp.eq.f32.partialorder %v866_v55, %v887_v25  ;;  %vm343_vm15 = vcmp.eq.f32.partialorder %v860_v52, %v887_v25  ;;  %vm344_vm0 = vcmp.eq.f32.partialorder %v879_v0, %v887_v25  ;;  %vm345_vm1 = vcmp.eq.f32.partialorder %v874_v60, %v887_v25 }
 0x13f   :  { %v346_v33 = vsel %vm330_vm2, %v314_v13, 1073741824  ;;  %v347_v34 = vsel %vm331_vm3, %v315_v16, 1073741824  ;;  %v348_v35 = vsel %vm332_vm4, %v316_v18, 1073741824  ;;  %v349_v36 = vsel %vm333_vm5, %v317_v19, 1073741824 }
 0x140   :  { %v350_v37 = vsel %vm334_vm6, %v318_v20, 1073741824  ;;  %v351_v38 = vsel %vm335_vm7, %v319_v21, 1073741824  ;;  %v352_v39 = vsel %vm336_vm8, %v320_v22, 1073741824  ;;  %v353_v40 = vsel %vm337_vm9, %v321_v23, 1073741824 }
 0x141   :  { %v354_v41 = vsel %vm338_vm10, %v322_v24, 1073741824  ;;  %v355_v42 = vsel %vm339_vm11, %v323_v26, 1073741824  ;;  %v356_v43 = vsel %vm340_vm12, %v324_v27, 1073741824  ;;  %v357_v45 = vsel %vm341_vm13, %v325_v28, 1073741824 }
 0x142   :  { %v358_v47 = vsel %vm342_vm14, %v326_v29, 1073741824  ;;  %v359_v46 = vsel %vm343_vm15, %v327_v30, 1073741824  ;;  %v360_v44 = vsel %vm344_vm0, %v328_v31, 1073741824  ;;  %v361_v49 = vsel %vm345_vm1, %v329_v32, 1073741824 }
 0x143   :  { %vm362_vm2 = vcmp.lt.s32.totalorder %v346_v33, %v350_v37  ;;  %vm364_vm3 = vcmp.lt.s32.totalorder %v347_v34, %v351_v38  ;;  %vm366_vm4 = vcmp.lt.s32.totalorder %v348_v35, %v352_v39  ;;  %vm368_vm5 = vcmp.lt.s32.totalorder %v349_v36, %v353_v40 }
 0x144   :  { %v363_v48 = vsel %vm362_vm2, %v346_v33, %v350_v37  ;;  %v365_v50 = vsel %vm364_vm3, %v347_v34, %v351_v38  ;;  %v367_v51 = vsel %vm366_vm4, %v348_v35, %v352_v39  ;;  %v369_v53 = vsel %vm368_vm5, %v349_v36, %v353_v40 }
 0x145   :  { %vm370_vm6 = vcmp.lt.s32.totalorder %v363_v48, %v354_v41  ;;  %vm372_vm7 = vcmp.lt.s32.totalorder %v365_v50, %v355_v42  ;;  %vm374_vm8 = vcmp.lt.s32.totalorder %v367_v51, %v356_v43  ;;  %vm376_vm9 = vcmp.lt.s32.totalorder %v369_v53, %v357_v45 }
 0x146   :  { %v371_v52 = vsel %vm370_vm6, %v363_v48, %v354_v41  ;;  %v373_v54 = vsel %vm372_vm7, %v365_v50, %v355_v42  ;;  %v375_v55 = vsel %vm374_vm8, %v367_v51, %v356_v43  ;;  %v377_v56 = vsel %vm376_vm9, %v369_v53, %v357_v45 }
 0x147   :  { %vm378_vm10 = vcmp.lt.s32.totalorder %v371_v52, %v358_v47  ;;  %vm380_vm11 = vcmp.lt.s32.totalorder %v373_v54, %v359_v46  ;;  %vm382_vm12 = vcmp.lt.s32.totalorder %v375_v55, %v360_v44  ;;  %vm384_vm13 = vcmp.lt.s32.totalorder %v377_v56, %v361_v49 }
 0x148   :  { %v379_v59 = vsel %vm378_vm10, %v371_v52, %v358_v47  ;;  %v381_v60 = vsel %vm380_vm11, %v373_v54, %v359_v46  ;;  %v383_v61 = vsel %vm382_vm12, %v375_v55, %v360_v44  ;;  %v385_v62 = vsel %vm384_vm13, %v377_v56, %v361_v49 }
 0x149   :  { %vm386_vm14 = vcmp.lt.s32.totalorder %v379_v59, %v381_v60  ;;  %vm388_vm15 = vcmp.lt.s32.totalorder %v383_v61, %v385_v62  ;;  %vm405_vm0 = vcmp.lt.f32.partialorder %v887_v25, %v404_v57 }
 0x14a   :  { %v387_v63 = vsel %vm386_vm14, %v379_v59, %v381_v60  ;;  %v389_v0 = vsel %vm388_vm15, %v383_v61, %v385_v62  ;;  %v410_v1 = vsel %vm405_vm0, %v887_v25, %v409_v58 }
 0x14b   :  { %vm390_vm1 = vcmp.lt.s32.totalorder %v387_v63, %v389_v0  ;;  %411 = vst [vmem:[#allocation2] sm:$0x1] %v410_v1 }
 0x14c   :  { %v391_v2 = vsel %vm390_vm1, %v387_v63, %v389_v0 }
 0x14d   :  { %v392_v3 = vrot.slane %v391_v2, 4 }
 0x14f   :  { %vm393_vm2 = vcmp.lt.s32.totalorder %v391_v2, %v392_v3 }
 0x150   :  { %v394_v4 = vsel %vm393_vm2, %v391_v2, %v392_v3 }
 0x151   :  { %v395_v5 = vrot.slane %v394_v4, 2 }
 0x153   :  { %vm396_vm3 = vcmp.lt.s32.totalorder %v394_v4, %v395_v5 }
 0x154   :  { %v397_v6 = vsel %vm396_vm3, %v394_v4, %v395_v5 }
 0x155   :  { %v398_v7 = vrot.slane %v397_v6, 1 }
 0x157   :  { %vm399_vm4 = vcmp.lt.s32.totalorder %v397_v6, %v398_v7 }
 0x158   :  { %v400_v9 = vsel %vm399_vm4, %v397_v6, %v398_v7 }
 0x159   :  { %v407_v10 = vsel %vm405_vm0, %v400_v9, %v406_v8 }
 0x15a   :  { %408 = vst [vmem:[#allocation3] sm:$0x1] %v407_v10 }
 0x161   :  { %v415_v11 = vld [vmem:[#allocation3] sm:$0x1] }
 0x162   :  { %416 = vst [vmem:[#allocation4] sm:$0x1] %v415_v11 }
 0x163   :  { %629 = shalt.err (!%p626_p4)
}
 0x164   :  { %s630_s20 = scalar_lea.hbm %s987_s2, 16 }
 0x165   :  { %p631_p5 = scmp.ne.s32.totalorder %s987_s2, %s630_s20  ;;  %p634_p6 = scmp.lt.u32.totalorder %s630_s20, %s987_s2 }
 0x167   :  { %p636_p7 = pnand %p634_p6, %p631_p5 }
 0x169   :  { %639 = shalt.err (!%p636_p7)
}
 0x16a   :  { %426 = dma.vmem_to_hbm [thread:$0]  %s424_s16, 16, %s987_s2, [#allocation5]  }
 0x16b   :  { %640 = dma.done.wait [#allocation5], 16  }
 0x16c   :  { %641 = vsyncadd [#allocation5], 4294967280 }
 0x16d   :  { %430 = vsyncpa [#allocation5], 1 }

</bundles_post_ra>
